<compile_context>
chip_gen: v7x
topology: tpu7x:2x2x1
jax: 0.10.0
libtpu: 0.0.40
codegen_flags: <defaults>
</compile_context>

<pallas_src>
import functools

import jax
import jax.numpy as jnp
from jax.experimental import pallas as pl
from jax.experimental.pallas import tpu as pltpu


def _round_up(x, m):
    return ((x + m - 1) // m) * m


def _lazy_second_loss_kernel(q_ref, pos_ref, neg_ref, oneg_ref, out_ref, *,
                             margin, batch, tb, num_pos, num_neg, dim):
    # q_ref    : [TB, D]        (query)
    # pos_ref  : [TB, P*D]      (positives, flattened along lanes)
    # neg_ref  : [TB, N*D]      (negatives, flattened along lanes)
    # oneg_ref : [TB, D]        (other_neg)
    # out_ref  : [1, 8, 128]    (per-tile partial hinge-sum, lane-dense)
    q = q_ref[...].astype(jnp.float32)        # [TB, D]
    oneg = oneg_ref[...].astype(jnp.float32)  # [TB, D]

    # Min over positives of squared distances; single sqrt after the min.
    best_pos_sq = None
    for p in range(num_pos):
        diff = pos_ref[:, p * dim:(p + 1) * dim].astype(jnp.float32) - q
        d_sq = jnp.sum(diff * diff, axis=-1, keepdims=True)       # [TB, 1]
        best_pos_sq = d_sq if best_pos_sq is None else jnp.minimum(
            best_pos_sq, d_sq)
    best_pos = jnp.sqrt(best_pos_sq)                               # [TB, 1]

    # Rows originating from the (possibly ragged) last block are masked with a
    # select AFTER the hinge so undefined data cannot poison the sum.
    row = pl.program_id(0) * tb + jax.lax.broadcasted_iota(
        jnp.int32, (tb, 1), 0)                                     # [TB, 1]
    valid = row < batch

    total = jnp.zeros((tb, 1), jnp.float32)
    for n in range(num_neg):
        diff = neg_ref[:, n * dim:(n + 1) * dim].astype(jnp.float32) - oneg
        d_neg = jnp.sqrt(jnp.sum(diff * diff, axis=-1, keepdims=True))
        hinge = jnp.maximum(best_pos - d_neg + margin, 0.0)        # [TB, 1]
        total = total + jnp.where(valid, hinge, 0.0)

    out_ref[...] = jnp.broadcast_to(jnp.sum(total), (1, 8, 128))


def lazy_second_loss(q_vec, pos_vecs, neg_vecs, other_neg, margin=0.2):
    """Pallas implementation of LazySecondLoss.forward. Returns a scalar."""
    B, one, D = q_vec.shape
    assert one == 1
    P = pos_vecs.shape[1]
    N = neg_vecs.shape[1]
    assert D % 128 == 0, "feature_dim must be a multiple of 128"

    # Free contiguous reshapes (no HBM copies): batch -> sublanes, feature(s)
    # -> lanes.  The small P/N axes are folded into the lane dimension and
    # unrolled inside the kernel with static lane-aligned slices.
    q2 = q_vec.reshape(B, D)
    pos2 = pos_vecs.reshape(B, P * D)
    neg2 = neg_vecs.reshape(B, N * D)
    oneg2 = other_neg.reshape(B, D)

    itemsize = jnp.dtype(q_vec.dtype).itemsize
    bytes_per_row = (2 + P + N) * D * itemsize

    # Per-step VMEM budget derived from the actual chip (v5e/v6e: 128 MiB
    # physical, v7x: 64 MiB).  ~12 MiB per step; double-buffered inputs then
    # stay well under v7x's 64 MiB while amortizing per-step overhead.
    try:
        vmem_cap = int(pltpu.get_tpu_info().vmem_capacity_bytes)
    except Exception:
        vmem_cap = 64 * 1024 * 1024  # conservative (v7x per-core) fallback
    per_step_budget = min(12 * 1024 * 1024, vmem_cap // 4)

    # TODO(synk): if a single 8-row group (8 * bytes_per_row) overshoots the
    # budget (huge P/N*D), add a feature-axis grid dimension with a squared-
    # distance accumulator instead of letting the block blow the VMEM limit.
    tb = max(8, (per_step_budget // bytes_per_row) // 8 * 8)
    # Prefer >= 2 grid steps so both v7x TensorCores get work and the DMA
    # pipeline has something to overlap (no-op for tiny B / single-TC chips).
    if B > 8:
        tb = min(tb, _round_up(-(-B // 2), 8))
    tb = min(tb, _round_up(B, 8))
    num_tiles = -(-B // tb)  # ragged last block handled by the in-kernel mask

    step_bytes = tb * bytes_per_row
    vmem_limit = 2 * step_bytes + (2 << 20)          # double-buffered + slack
    vmem_limit = max(vmem_limit, 16 << 20)
    vmem_limit = min(vmem_limit, vmem_cap * 3 // 4)

    kernel = functools.partial(
        _lazy_second_loss_kernel, margin=float(margin), batch=B, tb=tb,
        num_pos=P, num_neg=N, dim=D)

    cost = pl.CostEstimate(
        flops=3 * B * (P + N) * D,
        transcendentals=B * (1 + N),
        bytes_accessed=itemsize * B * D * (2 + P + N)
        + num_tiles * 8 * 128 * 4,
    )

    partials = pl.pallas_call(
        kernel,
        out_shape=jax.ShapeDtypeStruct((num_tiles, 8, 128), jnp.float32),
        grid=(num_tiles,),
        in_specs=[
            pl.BlockSpec((tb, D), lambda i: (i, 0)),
            pl.BlockSpec((tb, P * D), lambda i: (i, 0)),
            pl.BlockSpec((tb, N * D), lambda i: (i, 0)),
            pl.BlockSpec((tb, D), lambda i: (i, 0)),
        ],
        out_specs=pl.BlockSpec((1, 8, 128), lambda i: (i, 0, 0)),
        compiler_params=pltpu.CompilerParams(
            dimension_semantics=("parallel",),
            vmem_limit_bytes=int(vmem_limit)),
        cost_estimate=cost,
    )(q2, pos2, neg2, oneg2)

    total = jnp.sum(partials[:, 0, 0])
    return total / (B * N)


def _reference_loss(q_vec, pos_vecs, neg_vecs, other_neg, margin=0.2):
    """Plain-JAX reference matching the PyTorch module exactly."""
    pos_d = jnp.linalg.norm(q_vec - pos_vecs, axis=2)            # [B, P]
    best_pos = jnp.min(pos_d, axis=1, keepdims=True)             # [B, 1]
    neg_d = jnp.linalg.norm(neg_vecs - other_neg, axis=2)        # [B, N]
    loss = jnp.maximum(best_pos - neg_d + margin, 0.0)
    return jnp.mean(loss)


if __name__ == "__main__":
    # Small shapes consistent with the module: feature_dim a multiple of 128.
    B, P, N, D = 2, 2, 2, 256
    key = jax.random.PRNGKey(0)
    kq, kp, kn, ko = jax.random.split(key, 4)

    q_vec = jax.random.normal(kq, (B, 1, D), dtype=jnp.float32)
    pos_vecs = jax.random.normal(kp, (B, P, D), dtype=jnp.float32)
    neg_vecs = jax.random.normal(kn, (B, N, D), dtype=jnp.float32)
    other_neg = jax.random.normal(ko, (B, 1, D), dtype=jnp.float32)

    loss = lazy_second_loss(q_vec, pos_vecs, neg_vecs, other_neg, margin=0.2)
    loss = jax.block_until_ready(loss)

    ref = _reference_loss(q_vec, pos_vecs, neg_vecs, other_neg, margin=0.2)
    assert jnp.allclose(loss, ref, atol=1e-5, rtol=1e-5), (loss, ref)

    print("KERNEL_OK")
</pallas_src>

<mosaic_0001>
module attributes {stable_mosaic.version = 11 : i64} {
  func.func @_lazy_second_loss_kernel(%arg0: i32, %arg1: memref<8x256xf32, #tpu.memory_space<vmem>>, %arg2: memref<8x512xf32, #tpu.memory_space<vmem>>, %arg3: memref<8x512xf32, #tpu.memory_space<vmem>>, %arg4: memref<8x256xf32, #tpu.memory_space<vmem>>, %arg5: memref<1x8x128xf32, #tpu.memory_space<vmem>>) attributes {dimension_semantics = [#tpu.dimension_semantics<parallel>], iteration_bounds = array<i64: 1>, scalar_prefetch = 0 : i64, scratch_operands = 0 : i64, tpu.core_type = #tpu.core_type<tc>, window_params = [{transform_indices = @transform_0, window_bounds = array<i64: 8, 256>}, {transform_indices = @transform_1, window_bounds = array<i64: 8, 512>}, {transform_indices = @transform_2, window_bounds = array<i64: 8, 512>}, {transform_indices = @transform_3, window_bounds = array<i64: 8, 256>}, {transform_indices = @transform_4, window_bounds = array<i64: 1, 8, 128>}]} {
    %c0 = arith.constant 0 : index
    %c0_0 = arith.constant 0 : index
    %0 = vector.load %arg1[%c0, %c0_0] : memref<8x256xf32, #tpu.memory_space<vmem>>, vector<8x256xf32>
    %c0_1 = arith.constant 0 : index
    %c0_2 = arith.constant 0 : index
    %1 = vector.load %arg4[%c0_1, %c0_2] : memref<8x256xf32, #tpu.memory_space<vmem>>, vector<8x256xf32>
    %c0_3 = arith.constant 0 : index
    %c0_4 = arith.constant 0 : index
    %2 = vector.load %arg2[%c0_3, %c0_4] : memref<8x512xf32, #tpu.memory_space<vmem>>, vector<8x256xf32>
    %3 = arith.subf %2, %0 : vector<8x256xf32>
    %4 = arith.mulf %3, %3 : vector<8x256xf32>
    %cst = arith.constant dense<0.000000e+00> : vector<8xf32>
    %5 = vector.multi_reduction <add>, %4, %cst [1] : vector<8x256xf32> to vector<8xf32>
    %6 = vector.shape_cast %5 : vector<8xf32> to vector<8x1xf32>
    %c0_5 = arith.constant 0 : index
    %c256 = arith.constant 256 : index
    %7 = vector.load %arg2[%c0_5, %c256] : memref<8x512xf32, #tpu.memory_space<vmem>>, vector<8x256xf32>
    %8 = arith.subf %7, %0 : vector<8x256xf32>
    %9 = arith.mulf %8, %8 : vector<8x256xf32>
    %cst_6 = arith.constant dense<0.000000e+00> : vector<8xf32>
    %10 = vector.multi_reduction <add>, %9, %cst_6 [1] : vector<8x256xf32> to vector<8xf32>
    %11 = vector.shape_cast %10 : vector<8xf32> to vector<8x1xf32>
    %12 = arith.minimumf %6, %11 : vector<8x1xf32>
    %13 = math.sqrt %12 : vector<8x1xf32>
    %c8_i32 = arith.constant 8 : i32
    %14 = arith.muli %arg0, %c8_i32 : i32
    %15 = tpu.iota {dimensions = array<i32: 0>} : vector<8x1xi32>
    %16 = vector.broadcast %14 : i32 to vector<8x1xi32>
    %17 = arith.addi %16, %15 : vector<8x1xi32>
    %c2_i32 = arith.constant 2 : i32
    %18 = vector.broadcast %c2_i32 : i32 to vector<8x1xi32>
    %19 = arith.cmpi slt, %17, %18 : vector<8x1xi32>
    %cst_7 = arith.constant 0.000000e+00 : f32
    %20 = vector.broadcast %cst_7 : f32 to vector<8x1xf32>
    %c0_8 = arith.constant 0 : index
    %c0_9 = arith.constant 0 : index
    %21 = vector.load %arg3[%c0_8, %c0_9] : memref<8x512xf32, #tpu.memory_space<vmem>>, vector<8x256xf32>
    %22 = arith.subf %21, %1 : vector<8x256xf32>
    %23 = arith.mulf %22, %22 : vector<8x256xf32>
    %cst_10 = arith.constant dense<0.000000e+00> : vector<8xf32>
    %24 = vector.multi_reduction <add>, %23, %cst_10 [1] : vector<8x256xf32> to vector<8xf32>
    %25 = vector.shape_cast %24 : vector<8xf32> to vector<8x1xf32>
    %26 = math.sqrt %25 : vector<8x1xf32>
    %27 = arith.subf %13, %26 : vector<8x1xf32>
    %cst_11 = arith.constant 2.000000e-01 : f32
    %28 = vector.broadcast %cst_11 : f32 to vector<8x1xf32>
    %29 = arith.addf %27, %28 : vector<8x1xf32>
    %cst_12 = arith.constant 0.000000e+00 : f32
    %30 = vector.broadcast %cst_12 : f32 to vector<8x1xf32>
    %31 = arith.maximumf %29, %30 : vector<8x1xf32>
    %cst_13 = arith.constant 0.000000e+00 : f32
    %32 = vector.broadcast %cst_13 : f32 to vector<8x1xf32>
    %33 = arith.select %19, %31, %32 : vector<8x1xi1>, vector<8x1xf32>
    %34 = arith.addf %20, %33 : vector<8x1xf32>
    %c0_14 = arith.constant 0 : index
    %c256_15 = arith.constant 256 : index
    %35 = vector.load %arg3[%c0_14, %c256_15] : memref<8x512xf32, #tpu.memory_space<vmem>>, vector<8x256xf32>
    %36 = arith.subf %35, %1 : vector<8x256xf32>
    %37 = arith.mulf %36, %36 : vector<8x256xf32>
    %cst_16 = arith.constant dense<0.000000e+00> : vector<8xf32>
    %38 = vector.multi_reduction <add>, %37, %cst_16 [1] : vector<8x256xf32> to vector<8xf32>
    %39 = vector.shape_cast %38 : vector<8xf32> to vector<8x1xf32>
    %40 = math.sqrt %39 : vector<8x1xf32>
    %41 = arith.subf %13, %40 : vector<8x1xf32>
    %cst_17 = arith.constant 2.000000e-01 : f32
    %42 = vector.broadcast %cst_17 : f32 to vector<8x1xf32>
    %43 = arith.addf %41, %42 : vector<8x1xf32>
    %cst_18 = arith.constant 0.000000e+00 : f32
    %44 = vector.broadcast %cst_18 : f32 to vector<8x1xf32>
    %45 = arith.maximumf %43, %44 : vector<8x1xf32>
    %cst_19 = arith.constant 0.000000e+00 : f32
    %46 = vector.broadcast %cst_19 : f32 to vector<8x1xf32>
    %47 = arith.select %19, %45, %46 : vector<8x1xi1>, vector<8x1xf32>
    %48 = arith.addf %34, %47 : vector<8x1xf32>
    %49 = vector.shape_cast %48 : vector<8x1xf32> to vector<1x8x1xf32>
    %cst_20 = arith.constant dense<0.000000e+00> : vector<1xf32>
    %50 = vector.multi_reduction <add>, %49, %cst_20 [1, 2] : vector<1x8x1xf32> to vector<1xf32>
    %51 = vector.shape_cast %50 : vector<1xf32> to vector<1x1x1xf32>
    %52 = vector.extract %51[0, 0, 0] : f32 from vector<1x1x1xf32>
    %53 = vector.broadcast %52 : f32 to vector<1x8x128xf32>
    %c0_21 = arith.constant 0 : index
    %c0_22 = arith.constant 0 : index
    %c0_23 = arith.constant 0 : index
    %54 = vector.load %arg5[%c0_21, %c0_22, %c0_23] : memref<1x8x128xf32, #tpu.memory_space<vmem>>, vector<1x8x128xf32>
    tpu.vector_store %arg5[%c0_21, %c0_22, %c0_23], %53 {strides = array<i32>} : memref<1x8x128xf32, #tpu.memory_space<vmem>>, vector<1x8x128xf32>,
    return
  }
  func.func @transform_0(%arg0: i32) -> (i32, i32) {
    %c0_i32 = arith.constant 0 : i32
    %c0_i32_0 = arith.constant 0 : i32
    return %arg0, %c0_i32 : i32, i32
  }
  func.func @transform_1(%arg0: i32) -> (i32, i32) {
    %c0_i32 = arith.constant 0 : i32
    %c0_i32_0 = arith.constant 0 : i32
    return %arg0, %c0_i32 : i32, i32
  }
  func.func @transform_2(%arg0: i32) -> (i32, i32) {
    %c0_i32 = arith.constant 0 : i32
    %c0_i32_0 = arith.constant 0 : i32
    return %arg0, %c0_i32 : i32, i32
  }
  func.func @transform_3(%arg0: i32) -> (i32, i32) {
    %c0_i32 = arith.constant 0 : i32
    %c0_i32_0 = arith.constant 0 : i32
    return %arg0, %c0_i32 : i32, i32
  }
  func.func @transform_4(%arg0: i32) -> (i32, i32, i32) {
    %c0_i32 = arith.constant 0 : i32
    %c0_i32_0 = arith.constant 0 : i32
    %c0_i32_1 = arith.constant 0 : i32
    return %arg0, %c0_i32, %c0_i32_0 : i32, i32, i32
  }
}

</mosaic_0001>

<bundles_post_ra>
// kernel: tpu_custom_call.1
= control target key start
LH: loop header
LB: loop body
LE: loop exit
PB: predicated region body
PF: predicated region fallthrough
CT: control target
= control target key end

     0   :  { %9 = vsyncpa [#allocation3], 0  ;;  %s509_s0 = inlined_call_operand.hbm [shape: f32[2,256], index: 0, kind: input, shape index: {}]   ;;  %s510_s1 = inlined_call_operand.hbm [shape: f32[2,512], index: 1, kind: input, shape index: {}]   ;;  %s511_s2 = inlined_call_operand.hbm [shape: f32[2,512], index: 2, kind: input, shape index: {}]   ;;  %s512_s3 = inlined_call_operand.vmem [shape: f32[2,256], index: 3, kind: input, shape index: {}]   ;;  %s513_s4 = inlined_call_operand.hbm [shape: f32[1,8,128], index: 4, kind: output, shape index: {}]  }
   0x1   :  { %10 = vsyncpa [#allocation6], 0 }
   0x2   :  { %11 = vsyncpa [#allocation4], 0 }
   0x3   :  { %16 = vsyncadd [#allocation3], 192  ;;  %s401_s15 = smov [#allocation2]   ;;  %s307_s19 = scalar_lea.hbm %s509_s0, 64 }
   0x4   :  { %s17_s16 = sshll.u32 %s401_s15, 4  ;;  %p308_p0 = scmp.ne.s32.totalorder %s509_s0, %s307_s19  ;;  %s18_s16 = int_to_ptr.vmem [resolvable:$true] %s17_s16 }
   0x5   :  { %p311_p1 = scmp.lt.u32.totalorder %s307_s19, %s509_s0 }
   0x7   :  { %p313_p2 = pnand %p311_p1, %p308_p0 }
   0x9   :  { %316 = shalt.err (!%p313_p2)
}
   0xa   :  { %s317_s24 = scalar_lea.vmem %s18_s16, 64  ;;  %s321_s25 = scalar_lea.vmem %s18_s16, 256 }
   0xb   :  { %p318_p3 = scmp.ne.s32.totalorder %s18_s16, %s317_s24  ;;  %p322_p4 = scmp.lt.s32.totalorder %s18_s16, %s18_s16 }
   0xc   :  { %p323_p5 = scmp.lt.s32.totalorder %s321_s25, %s317_s24 }
   0xe   :  { %p324_p6 = por %p323_p5, %p322_p4 }
  0x10   :  { %p325_p7 = pnand %p324_p6, %p318_p3 }
  0x12   :  { %328 = shalt.err (!%p325_p7)
}
  0x13   :  { %s402_s26 = smov 64   ;;  %s403_s27 = smov 4  }
  0x14   :  { %23 = dma.hbm_to_vmem [thread:$0]  %s509_s0, 64, %s18_s16, [#allocation3], %s402_s26, %s402_s26, %s403_s27  }
  0x15   :  { %28 = vsyncadd [#allocation6], 384  ;;  %s404_s30 = smov [#allocation5]   ;;  %s329_s8 = scalar_lea.hbm %s510_s1, 128 }
  0x16   :  { %s29_s5 = sshll.u32 %s404_s30, 4  ;;  %p330_p8 = scmp.ne.s32.totalorder %s510_s1, %s329_s8  ;;  %s30_s5 = int_to_ptr.vmem [resolvable:$true] %s29_s5 }
  0x17   :  { %p333_p9 = scmp.lt.u32.totalorder %s329_s8, %s510_s1 }
  0x19   :  { %p335_p10 = pnand %p333_p9, %p330_p8 }
  0x1b   :  { %338 = shalt.err (!%p335_p10)
}
  0x1c   :  { %s339_s13 = scalar_lea.vmem %s30_s5, 128  ;;  %s343_s0 = scalar_lea.vmem %s30_s5, 512 }
  0x1d   :  { %p340_p11 = scmp.ne.s32.totalorder %s30_s5, %s339_s13  ;;  %p344_p12 = scmp.lt.s32.totalorder %s30_s5, %s30_s5 }
  0x1e   :  { %p345_p13 = scmp.lt.s32.totalorder %s343_s0, %s339_s13 }
  0x20   :  { %p346_p0 = por %p345_p13, %p344_p12 }
  0x22   :  { %p347_p1 = pnand %p346_p0, %p340_p11 }
  0x24   :  { %350 = shalt.err (!%p347_p1)
}
  0x25   :  { %s405_s14 = smov 128   ;;  %s406_s15 = smov 8  }
  0x26   :  { %35 = dma.hbm_to_vmem [thread:$0]  %s510_s1, 128, %s30_s5, [#allocation6], %s405_s14, %s405_s14, %s406_s15  }
  0x27   :  { %40 = vsyncadd [#allocation6], 384  ;;  %s407_s18 = smov [#allocation7]   ;;  %s351_s22 = scalar_lea.hbm %s511_s2, 128 }
  0x28   :  { %s41_s19 = sshll.u32 %s407_s18, 4  ;;  %p352_p2 = scmp.ne.s32.totalorder %s511_s2, %s351_s22  ;;  %s42_s19 = int_to_ptr.vmem [resolvable:$true] %s41_s19 }
  0x29   :  { %p355_p3 = scmp.lt.u32.totalorder %s351_s22, %s511_s2 }
  0x2b   :  { %p357_p4 = pnand %p355_p3, %p352_p2 }
  0x2d   :  { %360 = shalt.err (!%p357_p4)
}
  0x2e   :  { %s361_s27 = scalar_lea.vmem %s42_s19, 128  ;;  %s365_s1 = scalar_lea.vmem %s42_s19, 512 }
  0x2f   :  { %p362_p5 = scmp.ne.s32.totalorder %s42_s19, %s361_s27  ;;  %p366_p6 = scmp.lt.s32.totalorder %s42_s19, %s42_s19 }
  0x30   :  { %p367_p7 = scmp.lt.s32.totalorder %s365_s1, %s361_s27 }
  0x32   :  { %p368_p8 = por %p367_p7, %p366_p6 }
  0x34   :  { %p369_p9 = pnand %p368_p8, %p362_p5 }
  0x36   :  { %372 = shalt.err (!%p369_p9)
}
  0x37   :  { %47 = dma.hbm_to_vmem [thread:$0]  %s511_s2, 128, %s42_s19, [#allocation6], %s405_s14, %s405_s14, %s406_s15  }
  0x38   :  { %395 = dma.done.wait [#allocation3], 256  }
  0x39   :  { %396 = vsyncadd [#allocation3], 4294967040 }
  0x3a   :  { %397 = dma.done.wait [#allocation6], 1024  }
  0x3b   :  { %398 = vsyncadd [#allocation6], 4294966272  ;;  %v88_v0 = vlaneseq  ;;  %v408_v1 = vmov 1983009808   ;;  %v63_v4 = vld [vmem:[%s512_s3] sm:$0xf] }
  0x3c   :  { %v86_v2 = vunpack.c.l.s4 %v408_v1  ;;  %v64_v5 = vld [vmem:[%s512_s3 + $0x4] sm:$0xf]  ;;  %v65_v6 = vld [vmem:[%s512_s3 + $0x8] sm:$0xf]  ;;  %v66_v8 = vld [vmem:[%s512_s3 + $0xc] sm:$0xf] }
  0x3d   :  { %v471_v3 = vshrl.u32 %v88_v0, 7  ;;  %v159_v9 = vld [vmem:[#allocation7] sm:$0xf]  ;;  %v160_v10 = vld [vmem:[#allocation7 + $0x8] sm:$0xf]  ;;  %vm261_vm7 = vcmask 7168  }
  0x3e   :  { %v87_v7 = vunpack.c.0.s8 %v86_v2  ;;  %v161_v11 = vld [vmem:[#allocation7 + $0x10] sm:$0xf]  ;;  %v162_v12 = vld [vmem:[#allocation7 + $0x18] sm:$0xf]  ;;  %v163_v13 = vsub.f32 %v159_v9, %v63_v4  ;;  %v164_v14 = vsub.f32 %v160_v10, %v64_v5  ;;  %v60_v18 = vld [vmem:[#allocation2 + $0x4] sm:$0xf] }
  0x3f   :  { %v59_v15 = vld [vmem:[#allocation2] sm:$0xf]  ;;  %v165_v16 = vsub.f32 %v161_v11, %v65_v6  ;;  %v166_v17 = vsub.f32 %v162_v12, %v66_v8  ;;  %v61_v19 = vld [vmem:[#allocation2 + $0x8] sm:$0xf]  ;;  %v62_v20 = vld [vmem:[#allocation2 + $0xc] sm:$0xf] }
  0x40   :  { %v486_v21 = vsub.s32 %v87_v7, %v471_v3  ;;  %v167_v22 = vmul.f32 %v163_v13, %v163_v13  ;;  %v168_v23 = vmul.f32 %v164_v14, %v164_v14  ;;  %v67_v24 = vld [vmem:[#allocation5] sm:$0xf]  ;;  %v68_v25 = vld [vmem:[#allocation5 + $0x8] sm:$0xf]  ;;  %v69_v26 = vld [vmem:[#allocation5 + $0x10] sm:$0xf] }
  0x41   :  { %v169_v27 = vmul.f32 %v165_v16, %v165_v16  ;;  %v170_v28 = vmul.f32 %v166_v17, %v166_v17  ;;  %v70_v29 = vld [vmem:[#allocation5 + $0x18] sm:$0xf]  ;;  %v71_v30 = vsub.f32 %v67_v24, %v59_v15  ;;  %v72_v31 = vsub.f32 %v68_v25, %v60_v18  ;;  %v210_v32 = vld [vmem:[#allocation7 + $0x4] sm:$0xf]  ;;  %v211_v33 = vld [vmem:[#allocation7 + $0xc] sm:$0xf] }
  0x42   :  { %v175_v34 = vcombine.low %v167_v22, %v168_v23  ;;  %v73_v35 = vsub.f32 %v69_v26, %v61_v19  ;;  %v74_v36 = vsub.f32 %v70_v29, %v62_v20  ;;  %v212_v37 = vld [vmem:[#allocation7 + $0x14] sm:$0xf]  ;;  %v213_v38 = vld [vmem:[#allocation7 + $0x1c] sm:$0xf]  ;;  %v214_v39 = vsub.f32 %v210_v32, %v63_v4  ;;  %v106_v44 = vld [vmem:[#allocation5 + $0x4] sm:$0xf] }
  0x43   :  { %v176_v40 = vcombine.low %v169_v27, %v170_v28  ;;  %v75_v41 = vmul.f32 %v71_v30, %v71_v30  ;;  %v76_v42 = vmul.f32 %v72_v31, %v72_v31  ;;  %v215_v43 = vsub.f32 %v211_v33, %v64_v5  ;;  %v107_v53 = vld [vmem:[#allocation5 + $0xc] sm:$0xf]  ;;  %v108_v54 = vld [vmem:[#allocation5 + $0x14] sm:$0xf]  ;;  %v109_v58 = vld [vmem:[#allocation5 + $0x1c] sm:$0xf] }
  0x44   :  { %v183_v45 = vrot.slane %v175_v34, %v486_v21  ;;  %v77_v46 = vmul.f32 %v73_v35, %v73_v35  ;;  %v78_v47 = vmul.f32 %v74_v36, %v74_v36  ;;  %v216_v48 = vsub.f32 %v212_v37, %v65_v6  ;;  %s409_s3 = smov [#allocation8]  }
  0x45   :  { %v190_v49 = vrot.slane %v176_v40, %v486_v21  ;;  %v83_v50 = vcombine.low %v75_v41, %v76_v42  ;;  %v217_v51 = vsub.f32 %v213_v38, %v66_v8  ;;  %v218_v52 = vmul.f32 %v214_v39, %v214_v39  ;;  %s280_s11 = sshll.u32 %s409_s3, 4  ;;  %s281_s11 = int_to_ptr.vmem [resolvable:$true] %s280_s11 }
  0x46   :  { %v84_v55 = vcombine.low %v77_v46, %v78_v47  ;;  %v219_v56 = vmul.f32 %v215_v43, %v215_v43  ;;  %v220_v57 = vmul.f32 %v216_v48, %v216_v48  ;;  %v110_v59 = vsub.f32 %v106_v44, %v59_v15  ;;  %s373_s13 = scalar_lea.vmem %s281_s11, 128  ;;  %p378_p11 = scmp.lt.s32.totalorder %s281_s11, %s281_s11 }
  0x47   :  { %v191_v60 = vcombine.low %v183_v45, %v190_v49  ;;  %v192_v61 = vcombine.high %v183_v45, %v190_v49  ;;  %v91_v62 = vrot.slane %v83_v50, %v486_v21  ;;  %v221_v63 = vmul.f32 %v217_v51, %v217_v51  ;;  %p374_p10 = scmp.ne.s32.totalorder %s281_s11, %s373_s13  ;;  %p379_p12 = scmp.lt.s32.totalorder %s373_s13, %s373_s13 }
  0x48   :  { %v98_v0 = vrot.slane %v84_v55, %v486_v21  ;;  %v226_v1 = vcombine.low %v218_v52, %v219_v56  ;;  %v111_v2 = vsub.f32 %v107_v53, %v60_v18  ;;  %v112_v4 = vsub.f32 %v108_v54, %v61_v19 }
  0x49   :  { %v195_v5 = vadd.f32 %v192_v61, %v191_v60  ;;  %v227_v6 = vcombine.low %v220_v57, %v221_v63  ;;  %v113_v7 = vsub.f32 %v109_v58, %v62_v20  ;;  %v114_v8 = vmul.f32 %v110_v59, %v110_v59  ;;  %p380_p13 = por %p379_p12, %p378_p11 }
  0x4a   :  { %v99_v9 = vcombine.low %v91_v62, %v98_v0  ;;  %v100_v10 = vcombine.high %v91_v62, %v98_v0  ;;  %v234_v11 = vrot.slane %v226_v1, %v486_v21  ;;  %v115_v12 = vmul.f32 %v111_v2, %v111_v2 }
  0x4b   :  { %196 = vadd.xlane.f32.xlu1 %v195_v5  ;;  %v241_v13 = vrot.slane %v227_v6, %v486_v21  ;;  %v116_v14 = vmul.f32 %v112_v4, %v112_v4  ;;  %v117_v15 = vmul.f32 %v113_v7, %v113_v7  ;;  %vm158_vm6 = vcmp.lt.s32.totalorder %v471_v3, 2  ;;  %p381_p0 = pnand %p380_p13, %p374_p10 }
  0x4c   :  { %v103_v16 = vadd.f32 %v100_v10, %v99_v9  ;;  %v122_v17 = vcombine.low %v114_v8, %v115_v12 }
  0x4d   :  { %v242_v22 = vcombine.low %v234_v11, %v241_v13  ;;  %v243_v23 = vcombine.high %v234_v11, %v241_v13  ;;  %v123_v18 = vcombine.low %v116_v14, %v117_v15 }
  0x4e   :  { %104 = vadd.xlane.f32.xlu0 %v103_v16  ;;  %v130_v19 = vrot.slane %v122_v17, %v486_v21 }
  0x4f   :  { %v246_v20 = vadd.f32 %v243_v23, %v242_v22  ;;  %v137_v24 = vrot.slane %v123_v18, %v486_v21 }
  0x51   :  { %247 = vadd.xlane.f32.xlu1 %v246_v20  ;;  %v138_v25 = vcombine.low %v130_v19, %v137_v24  ;;  %v139_v26 = vcombine.high %v130_v19, %v137_v24 }
  0x53   :  { %v142_v27 = vadd.f32 %v139_v26, %v138_v25 }
  0x55   :  { %143 = vadd.xlane.f32.xlu0 %v142_v27 }
  0xd8   :  { %v197_v28 = vpop.xlane.xlu1 %196 }
  0xd9   :  { %301 = vrsqrt.f32 %v197_v28  ;;  %vm200_vm0 = vcmp.eq.f32.partialorder %v197_v28, inf  ;;  %v203_v40 = vand.u32 2147483648, %v197_v28  ;;  %vm202_vm5 = vcmp.eq.f32.partialorder %v197_v28, 0.0 }
  0xdb   :  { %v105_v29 = vpop.xlane.xlu0 %104 }
  0xde   :  { %v248_v30 = vpop.xlane.xlu1 %247 }
  0xdf   :  { %303 = vrsqrt.f32 %v248_v30  ;;  %vm251_vm1 = vcmp.eq.f32.partialorder %v248_v30, inf  ;;  %v254_v41 = vand.u32 2147483648, %v248_v30  ;;  %vm253_vm3 = vcmp.eq.f32.partialorder %v248_v30, 0.0 }
  0xe2   :  { %v144_v31 = vpop.xlane.xlu0 %143 }
  0xe3   :  { %v145_v32 = vmin.f32 %v105_v29, %v144_v31  ;;  %v302_v33 = vpop.eup %301 }
  0xe4   :  { %v199_v35 = vmul.f32 %v302_v33, %v197_v28 }
  0xe5   :  { %305 = vrsqrt.f32 %v145_v32  ;;  %vm148_vm2 = vcmp.eq.f32.partialorder %v145_v32, inf  ;;  %v151_v42 = vand.u32 2147483648, %v145_v32  ;;  %vm150_vm4 = vcmp.eq.f32.partialorder %v145_v32, 0.0 }
  0xe6   :  { %v201_v39 = vsel %vm200_vm0, %v197_v28, %v199_v35 }
  0xe7   :  { %v204_v45 = vsel %vm202_vm5, %v203_v40, %v201_v39 }
  0xe9   :  { %v304_v34 = vpop.eup %303 }
  0xea   :  { %v250_v36 = vmul.f32 %v304_v34, %v248_v30 }
  0xec   :  { %v252_v21 = vsel %vm251_vm1, %v248_v30, %v250_v36 }
  0xed   :  { %v255_v46 = vsel %vm253_vm3, %v254_v41, %v252_v21 }
  0xef   :  { %v306_v37 = vpop.eup %305 }
  0xf0   :  { %v147_v38 = vmul.f32 %v306_v37, %v145_v32 }
  0xf2   :  { %v149_v43 = vsel %vm148_vm2, %v145_v32, %v147_v38 }
  0xf3   :  { %v152_v44 = vsel %vm150_vm4, %v151_v42, %v149_v43 }
  0xf4   :  { %v205_v47 = vsub.f32 %v152_v44, %v204_v45  ;;  %v256_v48 = vsub.f32 %v152_v44, %v255_v46 }
  0xf6   :  { %v206_v49 = vadd.f32 0.2, %v205_v47  ;;  %v257_v50 = vadd.f32 0.2, %v256_v48 }
  0xf8   :  { %v207_v51 = vmax.f32 %v206_v49, 0.0  ;;  %v258_v52 = vmax.f32 %v257_v50, 0.0 }
  0xfa   :  { %v208_v53 = vsel %vm158_vm6, %v207_v51, 0.0  ;;  %v259_v54 = vsel %vm158_vm6, %v258_v52, 0.0 }
  0xfb   :  { %v260_v55 = vadd.f32 %v259_v54, %v208_v53 }
  0xfd   :  { %v262_v56 = vsel %vm261_vm7, %v260_v55, 0.0 }
  0xfe   :  { %263 = vadd.xlane.f32.xlu0 %v262_v56 }
 0x18b   :  { %v264_v57 = vpop.xlane.xlu0 %263 }
 0x18c   :  { %v265_v58 = vrot.slane %v264_v57, 4 }
 0x18e   :  { %v266_v59 = vadd.f32 %v265_v58, %v264_v57 }
 0x190   :  { %v267_v60 = vrot.slane %v266_v59, 2 }
 0x192   :  { %v268_v61 = vadd.f32 %v267_v60, %v266_v59 }
 0x194   :  { %v269_v62 = vrot.slane %v268_v61, 1 }
 0x196   :  { %v270_v63 = vadd.f32 %v269_v62, %v268_v61 }
 0x198   :  { %290 = vpush %v270_v63 }
 0x1c9   :  { %s291_s12 = spop %290 }
 0x1ca   :  { %v272_v3 = vstv %s291_s12 }
 0x1cb   :  { %273 = vst [vmem:[#allocation8] sm:$0xff] %v272_v3 }
 0x1cc   :  { %384 = shalt.err (!%p381_p0)
}
 0x1cd   :  { %s385_s15 = scalar_lea.hbm %s513_s4, 128 }
 0x1ce   :  { %p386_p1 = scmp.ne.s32.totalorder %s513_s4, %s385_s15  ;;  %p389_p2 = scmp.lt.u32.totalorder %s385_s15, %s513_s4 }
 0x1d0   :  { %p391_p3 = pnand %p389_p2, %p386_p1 }
 0x1d2   :  { %394 = shalt.err (!%p391_p3)
}
 0x1d3   :  { %283 = dma.vmem_to_hbm [thread:$0]  %s281_s11, 128, %s513_s4, [#allocation4]  }
 0x1d4   :  { %399 = dma.done.wait [#allocation4], 128  }
 0x1d5   :  { %400 = vsyncadd [#allocation4], 4294967168 }
 0x1d6   :  { %287 = vsyncpa [#allocation3], 1 }
 0x1d7   :  { %288 = vsyncpa [#allocation6], 1 }
 0x1d8   :  { %289 = vsyncpa [#allocation4], 1 }

</bundles_post_ra>
